<compile_context>
chip_gen: v6e
topology: v6e:2x2x1
jax: 0.10.0
libtpu: 0.0.40
codegen_flags: <defaults>
</compile_context>

<pallas_src>
import functools

import jax
import jax.numpy as jnp
from jax.experimental import pallas as pl
from jax.experimental.pallas import tpu as pltpu


def _round_up(x, m):
    return ((x + m - 1) // m) * m


def _vmem_capacity_bytes():
    """Per-core VMEM capacity; conservative default if the query is unavailable."""
    try:
        return int(pltpu.get_tpu_info().vmem_capacity_bytes)
    except Exception:  # noqa: BLE001 - best-effort hardware query
        return 64 * 1024 * 1024  # v7x per-TC VMEM (smallest of the targets)


def _pick_tile(dim, cap):
    """Largest multiple of 128 <= cap that divides dim (dim is a multiple of 128)."""
    t = min(cap, dim)
    while dim % t != 0:
        t -= 128
    return t


# ---------------------------------------------------------------------------
# Fused whole-MLP kernel: weights/biases VMEM-resident, one dispatch total.
# ---------------------------------------------------------------------------
def _mlp_fused_kernel(*refs, num_layers):
    """refs = (x_ref, w0, b0, w1, b1, ..., w_{L-1}, b_{L-1}, o_ref).

    x_ref : (tm, d0_pad)      bf16 row tile of the padded input
    w_li  : (din_pad, dout_pad) bf16 (per-layer padding)
    b_li  : (1, dout_pad)     f32
    o_ref : (tm, dlast_pad)   f32 row tile of the padded output
    """
    x_ref = refs[0]
    o_ref = refs[-1]
    h = x_ref[...]  # bf16 activations, stay in VMEM/vregs across layers
    for li in range(num_layers):
        w_ref = refs[1 + 2 * li]
        b_ref = refs[2 + 2 * li]
        # bf16 x bf16 -> f32 accumulate on the MXU.
        acc = jnp.dot(h, w_ref[...], preferred_element_type=jnp.float32)
        acc = acc + b_ref[...]  # f32 epilogue (bias broadcast over rows)
        if li < num_layers - 1:
            # ReLU; dropout is identity in eval mode.  Back to bf16 for next MXU op.
            h = jnp.maximum(acc, 0.0).astype(jnp.bfloat16)
        else:
            o_ref[...] = acc.astype(o_ref.dtype)


def _mlp_fused_pallas(x_p, w_pads, b_pads, row_tile, *, single_buffer_weights=True):
    npad, d0 = x_p.shape
    num_layers = len(w_pads)
    d_last = w_pads[-1].shape[1]
    grid = npad // row_tile

    wb_kwargs = {"pipeline_mode": pl.Buffered(1)} if single_buffer_weights else {}

    in_specs = [pl.BlockSpec((row_tile, d0), lambda i: (i, 0))]  # x row tile
    for w in w_pads:
        din, dout = w.shape
        # Constant index_map -> block is fetched once and stays resident.
        in_specs.append(pl.BlockSpec((din, dout), lambda i: (0, 0), **wb_kwargs))
        in_specs.append(pl.BlockSpec((1, dout), lambda i: (0, 0), **wb_kwargs))
    out_spec = pl.BlockSpec((row_tile, d_last), lambda i: (i, 0))

    # Advisory cost estimate for XLA scheduling.
    flops = 2 * npad * sum(w.shape[0] * w.shape[1] for w in w_pads)
    bytes_accessed = (x_p.size * 2
                      + sum(w.size * 2 for w in w_pads)
                      + sum(b.size * 4 for b in b_pads)
                      + npad * d_last * 4)
    cost = pl.CostEstimate(flops=flops, transcendentals=0,
                           bytes_accessed=bytes_accessed)

    # VMEM budget: double-buffered x/out row tiles, single-buffered weight stack,
    # plus the in-kernel f32 acc / bf16 h temporaries of the unrolled layer chain.
    max_d = max([d0] + [w.shape[1] for w in w_pads])
    wbuf = 1 if single_buffer_weights else 2
    vmem_need = (2 * row_tile * d0 * 2                      # x tiles (bf16)
                 + 2 * row_tile * d_last * 4                # out tiles (f32)
                 + wbuf * sum(w.size * 2 for w in w_pads)   # weights (bf16)
                 + wbuf * sum(b.size * 4 for b in b_pads)   # biases (f32)
                 + 3 * row_tile * max_d * 4)                # in-kernel temporaries
    vmem_limit = int(min(int(0.85 * _vmem_capacity_bytes()),
                         max(vmem_need + (4 << 20), 16 << 20)))

    kernel = functools.partial(_mlp_fused_kernel, num_layers=num_layers)
    args = [x_p]
    for w, b in zip(w_pads, b_pads):
        args += [w, b]

    return pl.pallas_call(
        kernel,
        out_shape=jax.ShapeDtypeStruct((npad, d_last), jnp.float32),
        grid_spec=pltpu.PrefetchScalarGridSpec(
            num_scalar_prefetch=0,
            grid=(grid,),
            in_specs=in_specs,
            out_specs=out_spec,
        ),
        compiler_params=pltpu.CompilerParams(
            dimension_semantics=("parallel",),
            vmem_limit_bytes=vmem_limit,
        ),
        cost_estimate=cost,
    )(*args)


# ---------------------------------------------------------------------------
# Streaming fallback: one tiled matmul(+bias+ReLU) kernel per layer, used when
# the resident weight stack would not fit in VMEM (e.g. huge hidden dims on v7x).
# ---------------------------------------------------------------------------
def _linear_tiled_kernel(x_ref, w_ref, b_ref, o_ref, acc_ref, *, relu):
    @pl.when(pl.program_id(2) == 0)
    def _():
        acc_ref[...] = jnp.zeros_like(acc_ref)

    acc_ref[...] += jnp.dot(x_ref[...], w_ref[...],
                            preferred_element_type=jnp.float32)

    @pl.when(pl.program_id(2) == pl.num_programs(2) - 1)
    def _():
        y = acc_ref[...] + b_ref[...]
        if relu:
            y = jnp.maximum(y, 0.0)
        o_ref[...] = y.astype(o_ref.dtype)


def _linear_streaming_pallas(x_p, w_p, b_p, *, relu, out_dtype, tm):
    m, k = x_p.shape
    _, n = w_p.shape
    tn = _pick_tile(n, 512)
    tk = _pick_tile(k, 512)
    grid = (m // tm, n // tn, k // tk)
    kernel = functools.partial(_linear_tiled_kernel, relu=relu)
    return pl.pallas_call(
        kernel,
        out_shape=jax.ShapeDtypeStruct((m, n), out_dtype),
        grid_spec=pltpu.PrefetchScalarGridSpec(
            num_scalar_prefetch=0,
            grid=grid,
            in_specs=[pl.BlockSpec((tm, tk), lambda i, j, l: (i, l)),
                      pl.BlockSpec((tk, tn), lambda i, j, l: (l, j)),
                      pl.BlockSpec((1, tn), lambda i, j, l: (0, j))],
            out_specs=pl.BlockSpec((tm, tn), lambda i, j, l: (i, j)),
            scratch_shapes=[pltpu.VMEM((tm, tn), jnp.float32)],
        ),
        compiler_params=pltpu.CompilerParams(
            dimension_semantics=("parallel", "parallel", "arbitrary"),
        ),
    )(x_p, w_p, b_p)


# ---------------------------------------------------------------------------
# Host-side forward
# ---------------------------------------------------------------------------
def mlp_forward_pallas(x, w_pad, b_pad, *, in_dim, out_dim, out_dtype=jnp.float32,
                       row_tile=None, force_streaming=False):
    """MLP forward on pre-padded bf16 weights / f32 biases.

    x: [N, in_dim]; w_pad[i]: [din_pad_i, dout_pad_i] bf16; b_pad[i]: [1, dout_pad_i] f32.
    """
    n = x.shape[0]
    num_layers = len(w_pad)
    d0 = w_pad[0].shape[0]
    d_last = w_pad[-1].shape[1]

    # Row tile: fill the MXU M dim.  Small N -> single grid step (per-step
    # overhead and no megacore benefit on single-TC v5e/v6e); large N -> 256.
    if row_tile is None:
        row_tile = max(8, _round_up(n, 8)) if n <= 256 else 256
    row_tile = _round_up(row_tile, 8)
    npad = _round_up(n, row_tile)

    # Zero padding keeps the math exact: padded input columns are 0, padded
    # weight rows/cols are 0, padded biases are 0, so padded output columns
    # stay 0 through every layer.
    x_p = jnp.pad(x.astype(jnp.bfloat16), ((0, npad - n), (0, d0 - in_dim)))

    # Resident-fused vs. streaming decision by VMEM footprint.
    max_d = max([d0] + [w.shape[1] for w in w_pad])
    resident_need = (sum(w.size * 2 for w in w_pad)
                     + sum(b.size * 4 for b in b_pad)
                     + 2 * row_tile * d0 * 2
                     + 2 * row_tile * d_last * 4
                     + 3 * row_tile * max_d * 4)
    budget = int(0.8 * _vmem_capacity_bytes())

    if resident_need <= budget and not force_streaming:
        try:
            out_p = _mlp_fused_pallas(x_p, w_pad, b_pad, row_tile,
                                      single_buffer_weights=True)
        except Exception:  # noqa: BLE001 - fall back if Buffered(1) is unsupported
            out_p = _mlp_fused_pallas(x_p, w_pad, b_pad, row_tile,
                                      single_buffer_weights=False)
    else:
        # Stream weights layer by layer; intermediates round-trip HBM but the
        # weight stack never needs to be VMEM-resident all at once.
        h = x_p
        for li in range(num_layers):
            last = li == num_layers - 1
            h = _linear_streaming_pallas(
                h, w_pad[li], b_pad[li], relu=not last,
                out_dtype=jnp.float32 if last else jnp.bfloat16, tm=row_tile)
        out_p = h

    return out_p[:n, :out_dim].astype(out_dtype)


class MLPPallas:
    """Mirror of the PyTorch MLP: Linear->ReLU->(dropout) ... Linear (eval mode)."""

    def __init__(self, in_channels, hidden_channels, out_channels, num_layers,
                 dropout, key):
        self.dropout = dropout  # unused in eval mode (dropout == identity)
        dims = ([in_channels]
                + [hidden_channels] * (num_layers - 1)
                + [out_channels])
        self.dims = dims
        self.num_layers = num_layers
        self.weights, self.biases = [], []
        self.w_pad, self.b_pad = [], []      # packed ONCE, reused every forward
        for li in range(num_layers):
            fan_in, fan_out = dims[li], dims[li + 1]
            key, kw, kb = jax.random.split(key, 3)
            bound = 1.0 / (fan_in ** 0.5)    # PyTorch Linear default init range
            w = jax.random.uniform(kw, (fan_in, fan_out), jnp.float32,
                                   minval=-bound, maxval=bound)
            b = jax.random.uniform(kb, (fan_out,), jnp.float32,
                                   minval=-bound, maxval=bound)
            self.weights.append(w)
            self.biases.append(b)
            din_p = _round_up(fan_in, 128)
            dout_p = _round_up(fan_out, 128)
            self.w_pad.append(jnp.pad(w.astype(jnp.bfloat16),
                                      ((0, din_p - fan_in), (0, dout_p - fan_out))))
            self.b_pad.append(jnp.pad(b.astype(jnp.float32),
                                      (0, dout_p - fan_out)).reshape(1, dout_p))

    def __call__(self, x, force_streaming=False):
        return mlp_forward_pallas(x, self.w_pad, self.b_pad,
                                  in_dim=self.dims[0], out_dim=self.dims[-1],
                                  out_dtype=x.dtype,
                                  force_streaming=force_streaming)


if __name__ == "__main__":
    key = jax.random.PRNGKey(0)
    key, kx, kp = jax.random.split(key, 3)

    # Small shapes consistent with the module's forward: x is [num_nodes, in_channels]
    num_nodes = 16
    in_channels = 64
    hidden_channels = 32
    out_channels = 8
    num_layers = 3
    dropout = 0.5

    x = jax.random.normal(kx, (num_nodes, in_channels), jnp.float32)

    model = MLPPallas(in_channels, hidden_channels, out_channels, num_layers,
                      dropout, kp)

    out = jax.block_until_ready(model(x))
    out_stream = jax.block_until_ready(model(x, force_streaming=True))

    # Reference in plain JAX emulating the kernel's bf16-matmul / f32-accumulate
    # numerics (same params, eval-mode forward).
    ref = x.astype(jnp.bfloat16)
    for li in range(num_layers):
        w = model.weights[li].astype(jnp.bfloat16)
        b = model.biases[li]
        y = jnp.dot(ref, w, preferred_element_type=jnp.float32) + b
        ref = jnp.maximum(y, 0.0).astype(jnp.bfloat16) if li < num_layers - 1 else y

    assert out.shape == (num_nodes, out_channels), out.shape
    assert jnp.allclose(out, ref, atol=2e-2, rtol=2e-2), "fused path mismatch"
    assert jnp.allclose(out_stream, ref, atol=2e-2, rtol=2e-2), "streaming path mismatch"

    print("KERNEL_OK")
</pallas_src>

<mosaic_0001>
module attributes {stable_mosaic.version = 11 : i64} {
  func.func @_mlp_fused_kernel(%arg0: i32, %arg1: memref<16x128xbf16, #tpu.memory_space<vmem>>, %arg2: memref<128x128xbf16, #tpu.memory_space<vmem>>, %arg3: memref<1x128xf32, #tpu.memory_space<vmem>>, %arg4: memref<128x128xbf16, #tpu.memory_space<vmem>>, %arg5: memref<1x128xf32, #tpu.memory_space<vmem>>, %arg6: memref<128x128xbf16, #tpu.memory_space<vmem>>, %arg7: memref<1x128xf32, #tpu.memory_space<vmem>>, %arg8: memref<16x128xf32, #tpu.memory_space<vmem>>) attributes {dimension_semantics = [#tpu.dimension_semantics<parallel>], iteration_bounds = array<i64: 1>, scalar_prefetch = 0 : i64, scratch_operands = 0 : i64, tpu.core_type = #tpu.core_type<tc>, window_params = [{transform_indices = @transform_0, window_bounds = array<i64: 16, 128>}, {pipeline_mode = #tpu.pipeline_mode<synchronous>, transform_indices = @transform_1, window_bounds = array<i64: 128, 128>}, {pipeline_mode = #tpu.pipeline_mode<synchronous>, transform_indices = @transform_2, window_bounds = array<i64: 1, 128>}, {pipeline_mode = #tpu.pipeline_mode<synchronous>, transform_indices = @transform_3, window_bounds = array<i64: 128, 128>}, {pipeline_mode = #tpu.pipeline_mode<synchronous>, transform_indices = @transform_4, window_bounds = array<i64: 1, 128>}, {pipeline_mode = #tpu.pipeline_mode<synchronous>, transform_indices = @transform_5, window_bounds = array<i64: 128, 128>}, {pipeline_mode = #tpu.pipeline_mode<synchronous>, transform_indices = @transform_6, window_bounds = array<i64: 1, 128>}, {transform_indices = @transform_7, window_bounds = array<i64: 16, 128>}]} {
    %c0 = arith.constant 0 : index
    %c0_0 = arith.constant 0 : index
    %0 = vector.load %arg1[%c0, %c0_0] : memref<16x128xbf16, #tpu.memory_space<vmem>>, vector<16x128xbf16>
    %c0_1 = arith.constant 0 : index
    %c0_2 = arith.constant 0 : index
    %1 = vector.load %arg2[%c0_1, %c0_2] : memref<128x128xbf16, #tpu.memory_space<vmem>>, vector<128x128xbf16>
    %cst = arith.constant dense<0.000000e+00> : vector<16x128xf32>
    %2 = tpu.matmul %0, %1, %cst {dimension_numbers = #tpu.dot_dimension_numbers<[1], [0], [0], [1], [0, 0, 1, 1], [], []>} : vector<16x128xbf16>, vector<128x128xbf16>, vector<16x128xf32> -> vector<16x128xf32>
    %c0_3 = arith.constant 0 : index
    %c0_4 = arith.constant 0 : index
    %3 = vector.load %arg3[%c0_3, %c0_4] : memref<1x128xf32, #tpu.memory_space<vmem>>, vector<1x128xf32>
    %4 = vector.broadcast %3 : vector<1x128xf32> to vector<16x128xf32>
    %5 = arith.addf %2, %4 : vector<16x128xf32>
    %cst_5 = arith.constant 0.000000e+00 : f32
    %6 = vector.broadcast %cst_5 : f32 to vector<16x128xf32>
    %7 = arith.maximumf %5, %6 : vector<16x128xf32>
    %8 = arith.truncf %7 : vector<16x128xf32> to vector<16x128xbf16>
    %c0_6 = arith.constant 0 : index
    %c0_7 = arith.constant 0 : index
    %9 = vector.load %arg4[%c0_6, %c0_7] : memref<128x128xbf16, #tpu.memory_space<vmem>>, vector<128x128xbf16>
    %cst_8 = arith.constant dense<0.000000e+00> : vector<16x128xf32>
    %10 = tpu.matmul %8, %9, %cst_8 {dimension_numbers = #tpu.dot_dimension_numbers<[1], [0], [0], [1], [0, 0, 1, 1], [], []>} : vector<16x128xbf16>, vector<128x128xbf16>, vector<16x128xf32> -> vector<16x128xf32>
    %c0_9 = arith.constant 0 : index
    %c0_10 = arith.constant 0 : index
    %11 = vector.load %arg5[%c0_9, %c0_10] : memref<1x128xf32, #tpu.memory_space<vmem>>, vector<1x128xf32>
    %12 = vector.broadcast %11 : vector<1x128xf32> to vector<16x128xf32>
    %13 = arith.addf %10, %12 : vector<16x128xf32>
    %cst_11 = arith.constant 0.000000e+00 : f32
    %14 = vector.broadcast %cst_11 : f32 to vector<16x128xf32>
    %15 = arith.maximumf %13, %14 : vector<16x128xf32>
    %16 = arith.truncf %15 : vector<16x128xf32> to vector<16x128xbf16>
    %c0_12 = arith.constant 0 : index
    %c0_13 = arith.constant 0 : index
    %17 = vector.load %arg6[%c0_12, %c0_13] : memref<128x128xbf16, #tpu.memory_space<vmem>>, vector<128x128xbf16>
    %cst_14 = arith.constant dense<0.000000e+00> : vector<16x128xf32>
    %18 = tpu.matmul %16, %17, %cst_14 {dimension_numbers = #tpu.dot_dimension_numbers<[1], [0], [0], [1], [0, 0, 1, 1], [], []>} : vector<16x128xbf16>, vector<128x128xbf16>, vector<16x128xf32> -> vector<16x128xf32>
    %c0_15 = arith.constant 0 : index
    %c0_16 = arith.constant 0 : index
    %19 = vector.load %arg7[%c0_15, %c0_16] : memref<1x128xf32, #tpu.memory_space<vmem>>, vector<1x128xf32>
    %20 = vector.broadcast %19 : vector<1x128xf32> to vector<16x128xf32>
    %21 = arith.addf %18, %20 : vector<16x128xf32>
    %c0_17 = arith.constant 0 : index
    %c0_18 = arith.constant 0 : index
    %22 = vector.load %arg8[%c0_17, %c0_18] : memref<16x128xf32, #tpu.memory_space<vmem>>, vector<16x128xf32>
    tpu.vector_store %arg8[%c0_17, %c0_18], %21 {strides = array<i32>} : memref<16x128xf32, #tpu.memory_space<vmem>>, vector<16x128xf32>,
    return
  }
  func.func @transform_0(%arg0: i32) -> (i32, i32) {
    %c0_i32 = arith.constant 0 : i32
    %c0_i32_0 = arith.constant 0 : i32
    return %arg0, %c0_i32 : i32, i32
  }
  func.func @transform_1(%arg0: i32) -> (i32, i32) {
    %c0_i32 = arith.constant 0 : i32
    %c0_i32_0 = arith.constant 0 : i32
    %c0_i32_1 = arith.constant 0 : i32
    return %c0_i32, %c0_i32_0 : i32, i32
  }
  func.func @transform_2(%arg0: i32) -> (i32, i32) {
    %c0_i32 = arith.constant 0 : i32
    %c0_i32_0 = arith.constant 0 : i32
    %c0_i32_1 = arith.constant 0 : i32
    return %c0_i32, %c0_i32_0 : i32, i32
  }
  func.func @transform_3(%arg0: i32) -> (i32, i32) {
    %c0_i32 = arith.constant 0 : i32
    %c0_i32_0 = arith.constant 0 : i32
    %c0_i32_1 = arith.constant 0 : i32
    return %c0_i32, %c0_i32_0 : i32, i32
  }
  func.func @transform_4(%arg0: i32) -> (i32, i32) {
    %c0_i32 = arith.constant 0 : i32
    %c0_i32_0 = arith.constant 0 : i32
    %c0_i32_1 = arith.constant 0 : i32
    return %c0_i32, %c0_i32_0 : i32, i32
  }
  func.func @transform_5(%arg0: i32) -> (i32, i32) {
    %c0_i32 = arith.constant 0 : i32
    %c0_i32_0 = arith.constant 0 : i32
    %c0_i32_1 = arith.constant 0 : i32
    return %c0_i32, %c0_i32_0 : i32, i32
  }
  func.func @transform_6(%arg0: i32) -> (i32, i32) {
    %c0_i32 = arith.constant 0 : i32
    %c0_i32_0 = arith.constant 0 : i32
    %c0_i32_1 = arith.constant 0 : i32
    return %c0_i32, %c0_i32_0 : i32, i32
  }
  func.func @transform_7(%arg0: i32) -> (i32, i32) {
    %c0_i32 = arith.constant 0 : i32
    %c0_i32_0 = arith.constant 0 : i32
    return %arg0, %c0_i32 : i32, i32
  }
}

module attributes {stable_mosaic.version = 11 : i64} {
  func.func @_mlp_fused_kernel(%arg0: i32, %arg1: memref<16x128xbf16, #tpu.memory_space<vmem>>, %arg2: memref<128x128xbf16, #tpu.memory_space<vmem>>, %arg3: memref<1x128xf32, #tpu.memory_space<vmem>>, %arg4: memref<128x128xbf16, #tpu.memory_space<vmem>>, %arg5: memref<1x128xf32, #tpu.memory_space<vmem>>, %arg6: memref<128x128xbf16, #tpu.memory_space<vmem>>, %arg7: memref<1x128xf32, #tpu.memory_space<vmem>>, %arg8: memref<16x128xf32, #tpu.memory_space<vmem>>) attributes {dimension_semantics = [#tpu.dimension_semantics<parallel>], iteration_bounds = array<i64: 1>, scalar_prefetch = 0 : i64, scratch_operands = 0 : i64, tpu.core_type = #tpu.core_type<tc>, window_params = [{transform_indices = @transform_0, window_bounds = array<i64: 16, 128>}, {pipeline_mode = #tpu.pipeline_mode<synchronous>, transform_indices = @transform_1, window_bounds = array<i64: 128, 128>}, {pipeline_mode = #tpu.pipeline_mode<synchronous>, transform_indices = @transform_2, window_bounds = array<i64: 1, 128>}, {pipeline_mode = #tpu.pipeline_mode<synchronous>, transform_indices = @transform_3, window_bounds = array<i64: 128, 128>}, {pipeline_mode = #tpu.pipeline_mode<synchronous>, transform_indices = @transform_4, window_bounds = array<i64: 1, 128>}, {pipeline_mode = #tpu.pipeline_mode<synchronous>, transform_indices = @transform_5, window_bounds = array<i64: 128, 128>}, {pipeline_mode = #tpu.pipeline_mode<synchronous>, transform_indices = @transform_6, window_bounds = array<i64: 1, 128>}, {transform_indices = @transform_7, window_bounds = array<i64: 16, 128>}]} {
    %c0 = arith.constant 0 : index
    %c0_0 = arith.constant 0 : index
    %0 = vector.load %arg1[%c0, %c0_0] : memref<16x128xbf16, #tpu.memory_space<vmem>>, vector<16x128xbf16>
    %c0_1 = arith.constant 0 : index
    %c0_2 = arith.constant 0 : index
    %1 = vector.load %arg2[%c0_1, %c0_2] : memref<128x128xbf16, #tpu.memory_space<vmem>>, vector<128x128xbf16>
    %cst = arith.constant dense<0.000000e+00> : vector<16x128xf32>
    %2 = tpu.matmul %0, %1, %cst {dimension_numbers = #tpu.dot_dimension_numbers<[1], [0], [0], [1], [0, 0, 1, 1], [], []>} : vector<16x128xbf16>, vector<128x128xbf16>, vector<16x128xf32> -> vector<16x128xf32>
    %c0_3 = arith.constant 0 : index
    %c0_4 = arith.constant 0 : index
    %3 = vector.load %arg3[%c0_3, %c0_4] : memref<1x128xf32, #tpu.memory_space<vmem>>, vector<1x128xf32>
    %4 = vector.broadcast %3 : vector<1x128xf32> to vector<16x128xf32>
    %5 = arith.addf %2, %4 : vector<16x128xf32>
    %cst_5 = arith.constant 0.000000e+00 : f32
    %6 = vector.broadcast %cst_5 : f32 to vector<16x128xf32>
    %7 = arith.maximumf %5, %6 : vector<16x128xf32>
    %8 = arith.truncf %7 : vector<16x128xf32> to vector<16x128xbf16>
    %c0_6 = arith.constant 0 : index
    %c0_7 = arith.constant 0 : index
    %9 = vector.load %arg4[%c0_6, %c0_7] : memref<128x128xbf16, #tpu.memory_space<vmem>>, vector<128x128xbf16>
    %cst_8 = arith.constant dense<0.000000e+00> : vector<16x128xf32>
    %10 = tpu.matmul %8, %9, %cst_8 {dimension_numbers = #tpu.dot_dimension_numbers<[1], [0], [0], [1], [0, 0, 1, 1], [], []>} : vector<16x128xbf16>, vector<128x128xbf16>, vector<16x128xf32> -> vector<16x128xf32>
    %c0_9 = arith.constant 0 : index
    %c0_10 = arith.constant 0 : index
    %11 = vector.load %arg5[%c0_9, %c0_10] : memref<1x128xf32, #tpu.memory_space<vmem>>, vector<1x128xf32>
    %12 = vector.broadcast %11 : vector<1x128xf32> to vector<16x128xf32>
    %13 = arith.addf %10, %12 : vector<16x128xf32>
    %cst_11 = arith.constant 0.000000e+00 : f32
    %14 = vector.broadcast %cst_11 : f32 to vector<16x128xf32>
    %15 = arith.maximumf %13, %14 : vector<16x128xf32>
    %16 = arith.truncf %15 : vector<16x128xf32> to vector<16x128xbf16>
    %c0_12 = arith.constant 0 : index
    %c0_13 = arith.constant 0 : index
    %17 = vector.load %arg6[%c0_12, %c0_13] : memref<128x128xbf16, #tpu.memory_space<vmem>>, vector<128x128xbf16>
    %cst_14 = arith.constant dense<0.000000e+00> : vector<16x128xf32>
    %18 = tpu.matmul %16, %17, %cst_14 {dimension_numbers = #tpu.dot_dimension_numbers<[1], [0], [0], [1], [0, 0, 1, 1], [], []>} : vector<16x128xbf16>, vector<128x128xbf16>, vector<16x128xf32> -> vector<16x128xf32>
    %c0_15 = arith.constant 0 : index
    %c0_16 = arith.constant 0 : index
    %19 = vector.load %arg7[%c0_15, %c0_16] : memref<1x128xf32, #tpu.memory_space<vmem>>, vector<1x128xf32>
    %20 = vector.broadcast %19 : vector<1x128xf32> to vector<16x128xf32>
    %21 = arith.addf %18, %20 : vector<16x128xf32>
    %c0_17 = arith.constant 0 : index
    %c0_18 = arith.constant 0 : index
    %22 = vector.load %arg8[%c0_17, %c0_18] : memref<16x128xf32, #tpu.memory_space<vmem>>, vector<16x128xf32>
    tpu.vector_store %arg8[%c0_17, %c0_18], %21 {strides = array<i32>} : memref<16x128xf32, #tpu.memory_space<vmem>>, vector<16x128xf32>,
    return
  }
  func.func @transform_0(%arg0: i32) -> (i32, i32) {
    %c0_i32 = arith.constant 0 : i32
    %c0_i32_0 = arith.constant 0 : i32
    return %arg0, %c0_i32 : i32, i32
  }
  func.func @transform_1(%arg0: i32) -> (i32, i32) {
    %c0_i32 = arith.constant 0 : i32
    %c0_i32_0 = arith.constant 0 : i32
    %c0_i32_1 = arith.constant 0 : i32
    return %c0_i32, %c0_i32_0 : i32, i32
  }
  func.func @transform_2(%arg0: i32) -> (i32, i32) {
    %c0_i32 = arith.constant 0 : i32
    %c0_i32_0 = arith.constant 0 : i32
    %c0_i32_1 = arith.constant 0 : i32
    return %c0_i32, %c0_i32_0 : i32, i32
  }
  func.func @transform_3(%arg0: i32) -> (i32, i32) {
    %c0_i32 = arith.constant 0 : i32
    %c0_i32_0 = arith.constant 0 : i32
    %c0_i32_1 = arith.constant 0 : i32
    return %c0_i32, %c0_i32_0 : i32, i32
  }
  func.func @transform_4(%arg0: i32) -> (i32, i32) {
    %c0_i32 = arith.constant 0 : i32
    %c0_i32_0 = arith.constant 0 : i32
    %c0_i32_1 = arith.constant 0 : i32
    return %c0_i32, %c0_i32_0 : i32, i32
  }
  func.func @transform_5(%arg0: i32) -> (i32, i32) {
    %c0_i32 = arith.constant 0 : i32
    %c0_i32_0 = arith.constant 0 : i32
    %c0_i32_1 = arith.constant 0 : i32
    return %c0_i32, %c0_i32_0 : i32, i32
  }
  func.func @transform_6(%arg0: i32) -> (i32, i32) {
    %c0_i32 = arith.constant 0 : i32
    %c0_i32_0 = arith.constant 0 : i32
    %c0_i32_1 = arith.constant 0 : i32
    return %c0_i32, %c0_i32_0 : i32, i32
  }
  func.func @transform_7(%arg0: i32) -> (i32, i32) {
    %c0_i32 = arith.constant 0 : i32
    %c0_i32_0 = arith.constant 0 : i32
    return %arg0, %c0_i32 : i32, i32
  }
}

</mosaic_0001>

<bundles_post_ra>
// kernel: tpu_custom_call.1
= control target key start
LH: loop header
LB: loop body
LE: loop exit
PB: predicated region body
PF: predicated region fallthrough
CT: control target
= control target key end

     0   :  { %12 = vsyncpa [#allocation3], 0  ;;  %s830_s0 = inlined_call_operand.hbm [shape: bf16[16,128], index: 0, kind: input, shape index: {}]   ;;  %s831_s1 = inlined_call_operand.hbm [shape: bf16[128,128], index: 1, kind: input, shape index: {}]   ;;  %s832_s2 = inlined_call_operand.vmem [shape: f32[1,128], index: 2, kind: input, shape index: {}]   ;;  %s833_s3 = inlined_call_operand.hbm [shape: bf16[128,128], index: 3, kind: input, shape index: {}]   ;;  %s834_s4 = inlined_call_operand.vmem [shape: f32[1,128], index: 4, kind: input, shape index: {}]   ;;  %s835_s5 = inlined_call_operand.hbm [shape: bf16[128,128], index: 5, kind: input, shape index: {}]   ;;  %s836_s6 = inlined_call_operand.vmem [shape: f32[1,128], index: 6, kind: input, shape index: {}]   ;;  %s837_s7 = inlined_call_operand.hbm [shape: f32[16,128], index: 7, kind: output, shape index: {}]  }
   0x1   :  { %13 = vsyncpa [#allocation6], 0 }
   0x2   :  { %14 = vsyncpa [#allocation9], 0 }
   0x3   :  { %15 = vsyncpa [#allocation4], 0  ;;  %s713_s24 = smov [#allocation5]   ;;  %s714_s26 = smov [#allocation2]  }
   0x4   :  { %s33_s25 = sshll.u32 %s713_s24, 4  ;;  %s21_s27 = sshll.u32 %s714_s26, 4  ;;  %s34_s25 = int_to_ptr.vmem [resolvable:$true] %s33_s25  ;;  %s22_s27 = int_to_ptr.vmem [resolvable:$true] %s21_s27 }
   0x5   :  { %s613_s28 = scalar_lea.vmem %s34_s25, 1024  ;;  %p618_p1 = scmp.lt.s32.totalorder %s34_s25, %s34_s25 }
   0x6   :  { %p614_p0 = scmp.ne.s32.totalorder %s34_s25, %s613_s28  ;;  %p619_p2 = scmp.lt.s32.totalorder %s613_s28, %s613_s28 }
   0x8   :  { %p620_p3 = por %p619_p2, %p618_p1 }
   0xa   :  { %p621_p4 = pnand %p620_p3, %p614_p0 }
   0xc   :  { %624 = shalt.err (!%p621_p4)
}
   0xd   :  { %s715_s29 = smov 64   ;;  %s716_s30 = smov 4  }
   0xe   :  { %39 = dma.hbm_to_vmem [thread:$0]  %s831_s1, 1024, %s34_s25, [#allocation6], %s715_s29, %s715_s29, %s716_s30  }
   0xf   :  { %s633_s10 = scalar_lea.vmem %s22_s27, 128  ;;  %p638_p6 = scmp.lt.s32.totalorder %s22_s27, %s22_s27 }
  0x10   :  { %p634_p5 = scmp.ne.s32.totalorder %s22_s27, %s633_s10  ;;  %p639_p7 = scmp.lt.s32.totalorder %s633_s10, %s633_s10 }
  0x12   :  { %p640_p8 = por %p639_p7, %p638_p6 }
  0x14   :  { %p641_p9 = pnand %p640_p8, %p634_p5 }
  0x16   :  { %644 = shalt.err (!%p641_p9)
}
  0x17   :  { %27 = dma.hbm_to_vmem [thread:$0]  %s830_s0, 128, %s22_s27, [#allocation3], %s715_s29, %s715_s29, %s716_s30  }
  0x18   :  { %s717_s13 = smov [#allocation7]   ;;  %s718_s15 = smov [#allocation8]  }
  0x19   :  { %s47_s14 = sshll.u32 %s717_s13, 4  ;;  %s61_s16 = sshll.u32 %s718_s15, 4  ;;  %s48_s14 = int_to_ptr.vmem [resolvable:$true] %s47_s14  ;;  %s62_s16 = int_to_ptr.vmem [resolvable:$true] %s61_s16 }
  0x1a   :  { %s653_s1 = scalar_lea.vmem %s48_s14, 1024  ;;  %p658_p11 = scmp.lt.s32.totalorder %s48_s14, %s48_s14 }
  0x1b   :  { %p654_p10 = scmp.ne.s32.totalorder %s48_s14, %s653_s1  ;;  %p659_p12 = scmp.lt.s32.totalorder %s653_s1, %s653_s1 }
  0x1d   :  { %p660_p13 = por %p659_p12, %p658_p11 }
  0x1f   :  { %p661_p0 = pnand %p660_p13, %p654_p10 }
  0x21   :  { %664 = shalt.err (!%p661_p0)
}
  0x22   :  { %53 = dma.hbm_to_vmem [thread:$0]  %s833_s3, 1024, %s48_s14, [#allocation6], %s715_s29, %s715_s29, %s716_s30  }
  0x23   :  { %s673_s0 = scalar_lea.vmem %s62_s16, 1024  ;;  %p678_p2 = scmp.lt.s32.totalorder %s62_s16, %s62_s16 }
  0x24   :  { %p674_p1 = scmp.ne.s32.totalorder %s62_s16, %s673_s0  ;;  %p679_p3 = scmp.lt.s32.totalorder %s673_s0, %s673_s0 }
  0x26   :  { %p680_p4 = por %p679_p3, %p678_p2 }
  0x28   :  { %p681_p5 = pnand %p680_p4, %p674_p1 }
  0x2a   :  { %684 = shalt.err (!%p681_p5)
}
  0x2b   :  { %67 = dma.hbm_to_vmem [thread:$0]  %s835_s5, 1024, %s62_s16, [#allocation9], %s715_s29, %s715_s29, %s716_s30  }
  0x2c   :  { %705 = dma.done.wait [#allocation3], 128  }
  0x2d   :  { %706 = vsyncadd [#allocation3], 4294967168 }
  0x2e   :  { %707 = dma.done.wait [#allocation6], 2048  }
  0x2f   :  { %708 = vsyncadd [#allocation6], 4294965248 }
  0x30   :  { %709 = dma.done.wait [#allocation9], 1024  }
  0x31   :  { %710 = vsyncadd [#allocation9], 4294966272  ;;  %v719_v0 = vmov 0.0   ;;  %vm720_vm0 = vmmov 0   ;;  %v580_v1 = vld [vmem:[#allocation5 + $0x38] sm:$0xff]   ;;  %v581_v2 = vld [vmem:[#allocation5 + $0x30] sm:$0xff]  }
  0x32   :  { %509 = vmatprep.subr.bf16.mxu0 %v719_v0  ;;  %525 = vmatprep.mubr.msk.bf16.mxu0 %vm720_vm0, %v719_v0  ;;  %v582_v3 = vld [vmem:[#allocation5 + $0x28] sm:$0xff]   ;;  %v589_v4 = vld [vmem:[#allocation7 + $0x38] sm:$0xff]   ;;  %v583_v5 = vld [vmem:[#allocation5 + $0x20] sm:$0xff]   ;;  %s721_s24 = smov [#allocation10]  }
  0x33   :  { %529 = vmatprep.subr.bf16.mxu1 %v719_v0  ;;  %545 = vmatprep.mubr.msk.bf16.mxu1 %vm720_vm0, %v719_v0  ;;  %v590_v6 = vld [vmem:[#allocation7 + $0x30] sm:$0xff]   ;;  %v584_v7 = vld [vmem:[#allocation5 + $0x18] sm:$0xff]   ;;  %v591_v8 = vld [vmem:[#allocation7 + $0x28] sm:$0xff]   ;;  %s440_s25 = sshll.u32 %s721_s24, 4  ;;  %s441_s25 = int_to_ptr.vmem [resolvable:$true] %s440_s25 }
  0x34   :  { %510 = vmatpush3.bf16.msra.mxu0 %v580_v1  ;;  %530 = vmatpush3.bf16.msra.mxu1 %v589_v4  ;;  %v585_v9 = vld [vmem:[#allocation5 + $0x10] sm:$0xff]   ;;  %v592_v10 = vld [vmem:[#allocation7 + $0x20] sm:$0xff]   ;;  %v586_v11 = vld [vmem:[#allocation5 + $0x8] sm:$0xff]   ;;  %p690_p7 = scmp.lt.s32.totalorder %s441_s25, %s441_s25 }
  0x35   :  { %511 = vmatprep.subr.bf16.mxu0 %v719_v0  ;;  %531 = vmatprep.subr.bf16.mxu1 %v719_v0  ;;  %v593_v12 = vld [vmem:[#allocation7 + $0x18] sm:$0xff]   ;;  %v587_v13 = vld [vmem:[#allocation5] sm:$0xff]   ;;  %v594_v15 = vld [vmem:[#allocation7 + $0x10] sm:$0xff]  }
  0x36   :  { %v588_v14 = vld [vmem:[#allocation2] sm:$0xff]   ;;  %v595_v16 = vld [vmem:[#allocation7 + $0x8] sm:$0xff]   ;;  %v596_v17 = vld [vmem:[#allocation7] sm:$0xff]  }
  0x37   :  { %v597_v18 = vld [vmem:[#allocation8 + $0x38] sm:$0xff]   ;;  %v598_v19 = vld [vmem:[#allocation8 + $0x30] sm:$0xff]   ;;  %v599_v20 = vld [vmem:[#allocation8 + $0x28] sm:$0xff]  }
  0x38   :  { %512 = vmatpush3.bf16.msra.mxu0 %v581_v2  ;;  %532 = vmatpush3.bf16.msra.mxu1 %v590_v6  ;;  %v600_v21 = vld [vmem:[#allocation8 + $0x20] sm:$0xff]   ;;  %v601_v22 = vld [vmem:[#allocation8 + $0x18] sm:$0xff]   ;;  %v602_v33 = vld [vmem:[#allocation8 + $0x10] sm:$0xff]  }
  0x39   :  { %513 = vmatprep.subr.bf16.mxu0 %v719_v0  ;;  %533 = vmatprep.subr.bf16.mxu1 %v719_v0  ;;  %v454_v23 = vld [vmem:[%s832_s2] ss:$0 sm:$0xff]  ;;  %v603_v34 = vld [vmem:[#allocation8 + $0x8] sm:$0xff]   ;;  %v604_v35 = vld [vmem:[#allocation8] sm:$0xff]  }
  0x3a   :  { %v464_v36 = vld [vmem:[%s834_s4] ss:$0 sm:$0xff]  ;;  %s685_s4 = scalar_lea.vmem %s441_s25, 256 }
  0x3b   :  { %v473_v46 = vld [vmem:[%s836_s6] ss:$0 sm:$0xff]  ;;  %p686_p6 = scmp.ne.s32.totalorder %s441_s25, %s685_s4  ;;  %p691_p8 = scmp.lt.s32.totalorder %s685_s4, %s685_s4 }
  0x3c   :  { %514 = vmatpush3.bf16.msra.mxu0 %v582_v3  ;;  %534 = vmatpush3.bf16.msra.mxu1 %v591_v8 }
  0x3d   :  { %515 = vmatprep.subr.bf16.mxu0 %v719_v0  ;;  %535 = vmatprep.subr.bf16.mxu1 %v719_v0  ;;  %p692_p9 = por %p691_p8, %p690_p7 }
  0x3f   :  { %p693_p10 = pnand %p692_p9, %p686_p6 }
  0x40   :  { %516 = vmatpush3.bf16.msra.mxu0 %v583_v5  ;;  %536 = vmatpush3.bf16.msra.mxu1 %v592_v10 }
  0x41   :  { %517 = vmatprep.subr.bf16.mxu0 %v719_v0  ;;  %537 = vmatprep.subr.bf16.mxu1 %v719_v0 }
  0x44   :  { %518 = vmatpush3.bf16.msra.mxu0 %v584_v7  ;;  %538 = vmatpush3.bf16.msra.mxu1 %v593_v12 }
  0x45   :  { %519 = vmatprep.subr.bf16.mxu0 %v719_v0  ;;  %539 = vmatprep.subr.bf16.mxu1 %v719_v0 }
  0x48   :  { %520 = vmatpush3.bf16.msra.mxu0 %v585_v9  ;;  %540 = vmatpush3.bf16.msra.mxu1 %v594_v15 }
  0x49   :  { %521 = vmatprep.subr.bf16.mxu0 %v719_v0  ;;  %541 = vmatprep.subr.bf16.mxu1 %v719_v0 }
  0x4c   :  { %522 = vmatpush3.bf16.msra.mxu0 %v586_v11  ;;  %542 = vmatpush3.bf16.msra.mxu1 %v595_v16 }
  0x4d   :  { %523 = vmatprep.subr.bf16.mxu0 %v719_v0  ;;  %543 = vmatprep.subr.bf16.mxu1 %v719_v0 }
  0x50   :  { %524 = vmatpush3.bf16.msra.mxu0 %v587_v13  ;;  %544 = vmatpush3.bf16.msra.mxu1 %v596_v17 }
  0x51   :  { %549 = vmatprep.subr.bf16.mxu0 %v719_v0 }
  0x53   :  { %526 = vmatmul.mubr.bf16.vlgmr.msra.gmra.mxu0 %v588_v14 }
  0x54   :  { %565 = vmatprep.mubr.msk.bf16.mxu0 %vm720_vm0, %v719_v0  ;;  %550 = vmatpush3.bf16.msra.mxu0 %v597_v18 }
  0x55   :  { %551 = vmatprep.subr.bf16.mxu0 %v719_v0 }
  0x58   :  { %552 = vmatpush3.bf16.msra.mxu0 %v598_v19 }
  0x59   :  { %553 = vmatprep.subr.bf16.mxu0 %v719_v0 }
  0x5c   :  { %554 = vmatpush3.bf16.msra.mxu0 %v599_v20 }
  0x5d   :  { %555 = vmatprep.subr.bf16.mxu0 %v719_v0 }
  0x60   :  { %556 = vmatpush3.bf16.msra.mxu0 %v600_v21 }
  0x61   :  { %557 = vmatprep.subr.bf16.mxu0 %v719_v0 }
  0x64   :  { %558 = vmatpush3.bf16.msra.mxu0 %v601_v22 }
  0x65   :  { %559 = vmatprep.subr.bf16.mxu0 %v719_v0 }
  0x68   :  { %560 = vmatpush3.bf16.msra.mxu0 %v602_v33 }
  0x69   :  { %561 = vmatprep.subr.bf16.mxu0 %v719_v0 }
  0x6c   :  { %562 = vmatpush3.bf16.msra.mxu0 %v603_v34 }
  0x6d   :  { %563 = vmatprep.subr.bf16.mxu0 %v719_v0 }
  0x70   :  { %564 = vmatpush3.bf16.msra.mxu0 %v604_v35 }
 0x113   :  { %v196_v24 = vpop.f32.mrf.mxu0 }
 0x114   :  { %v197_v26 = vadd.f32 %v454_v23, %v196_v24 }
 0x115   :  { %v527_v25 = vpop.f32.mrf.mxu0 }
 0x116   :  { %v203_v30 = vmax.f32 %v197_v26, 0.0 }
 0x117   :  { %v199_v27 = vpop.f32.mrf.mxu0 }
 0x118   :  { %v200_v28 = vadd.f32 %v454_v23, %v199_v27 }
 0x119   :  { %v528_v29 = vpop.f32.mrf.mxu0 }
 0x11a   :  { %v204_v31 = vmax.f32 %v200_v28, 0.0 }
 0x11c   :  { %v205_v32 = vpack.c.bf16 %v204_v31, %v203_v30 }
 0x11e   :  { %546 = vmatmul.mubr.bf16.vlgmr.msra.gmra.mxu1 %v205_v32 }
 0x1de   :  { %v311_v37 = vpop.f32.mrf.mxu1 }
 0x1df   :  { %v312_v39 = vadd.f32 %v464_v36, %v311_v37 }
 0x1e0   :  { %v547_v38 = vpop.f32.mrf.mxu1 }
 0x1e1   :  { %v318_v43 = vmax.f32 %v312_v39, 0.0 }
 0x1e2   :  { %v314_v40 = vpop.f32.mrf.mxu1 }
 0x1e3   :  { %v315_v41 = vadd.f32 %v464_v36, %v314_v40 }
 0x1e4   :  { %v548_v42 = vpop.f32.mrf.mxu1 }
 0x1e5   :  { %v319_v44 = vmax.f32 %v315_v41, 0.0 }
 0x1e7   :  { %v320_v45 = vpack.c.bf16 %v319_v44, %v318_v43 }
 0x1e9   :  { %566 = vmatmul.mubr.bf16.vlgmr.msra.gmra.mxu0 %v320_v45 }
 0x2a9   :  { %v426_v47 = vpop.f32.mrf.mxu0 }
 0x2aa   :  { %v427_v48 = vadd.f32 %v473_v46, %v426_v47 }
 0x2ab   :  { %v567_v49 = vpop.f32.mrf.mxu0 }
 0x2ac   :  { %433 = vst [vmem:[#allocation10] sm:$0xff] %v427_v48 }
 0x2ad   :  { %v429_v50 = vpop.f32.mrf.mxu0 }
 0x2ae   :  { %v430_v51 = vadd.f32 %v473_v46, %v429_v50 }
 0x2af   :  { %v568_v52 = vpop.f32.mrf.mxu0 }
 0x2b0   :  { %434 = vst [vmem:[#allocation10 + $0x8] sm:$0xff] %v430_v51 }
 0x2b1   :  { %696 = shalt.err (!%p693_p10)
}
 0x2b2   :  { %s722_s26 = smov 128   ;;  %s723_s6 = smov 8  }
 0x2b3   :  { %446 = dma.vmem_to_hbm [thread:$0]  %s441_s25, 256, %s837_s7, [#allocation4], %s722_s26, %s722_s26, %s723_s6  }
 0x2b4   :  { %711 = dma.done.wait [#allocation4], 256  }
 0x2b5   :  { %712 = vsyncadd [#allocation4], 4294967040 }
 0x2b6   :  { %450 = vsyncpa [#allocation3], 1 }
 0x2b7   :  { %451 = vsyncpa [#allocation6], 1 }
 0x2b8   :  { %452 = vsyncpa [#allocation9], 1 }
 0x2b9   :  { %453 = vsyncpa [#allocation4], 1 }

// kernel: tpu_custom_call.1
= control target key start
LH: loop header
LB: loop body
LE: loop exit
PB: predicated region body
PF: predicated region fallthrough
CT: control target
= control target key end

     0   :  { %12 = vsyncpa [#allocation3], 0  ;;  %s830_s0 = inlined_call_operand.hbm [shape: bf16[16,128], index: 0, kind: input, shape index: {}]   ;;  %s831_s1 = inlined_call_operand.hbm [shape: bf16[128,128], index: 1, kind: input, shape index: {}]   ;;  %s832_s2 = inlined_call_operand.vmem [shape: f32[1,128], index: 2, kind: input, shape index: {}]   ;;  %s833_s3 = inlined_call_operand.hbm [shape: bf16[128,128], index: 3, kind: input, shape index: {}]   ;;  %s834_s4 = inlined_call_operand.vmem [shape: f32[1,128], index: 4, kind: input, shape index: {}]   ;;  %s835_s5 = inlined_call_operand.hbm [shape: bf16[128,128], index: 5, kind: input, shape index: {}]   ;;  %s836_s6 = inlined_call_operand.vmem [shape: f32[1,128], index: 6, kind: input, shape index: {}]   ;;  %s837_s7 = inlined_call_operand.hbm [shape: f32[16,128], index: 7, kind: output, shape index: {}]  }
   0x1   :  { %13 = vsyncpa [#allocation6], 0 }
   0x2   :  { %14 = vsyncpa [#allocation9], 0 }
   0x3   :  { %15 = vsyncpa [#allocation4], 0  ;;  %s713_s24 = smov [#allocation5]   ;;  %s714_s26 = smov [#allocation2]  }
   0x4   :  { %s33_s25 = sshll.u32 %s713_s24, 4  ;;  %s21_s27 = sshll.u32 %s714_s26, 4  ;;  %s34_s25 = int_to_ptr.vmem [resolvable:$true] %s33_s25  ;;  %s22_s27 = int_to_ptr.vmem [resolvable:$true] %s21_s27 }
   0x5   :  { %s613_s28 = scalar_lea.vmem %s34_s25, 1024  ;;  %p618_p1 = scmp.lt.s32.totalorder %s34_s25, %s34_s25 }
   0x6   :  { %p614_p0 = scmp.ne.s32.totalorder %s34_s25, %s613_s28  ;;  %p619_p2 = scmp.lt.s32.totalorder %s613_s28, %s613_s28 }
   0x8   :  { %p620_p3 = por %p619_p2, %p618_p1 }
   0xa   :  { %p621_p4 = pnand %p620_p3, %p614_p0 }
   0xc   :  { %624 = shalt.err (!%p621_p4)
}
   0xd   :  { %s715_s29 = smov 64   ;;  %s716_s30 = smov 4  }
   0xe   :  { %39 = dma.hbm_to_vmem [thread:$0]  %s831_s1, 1024, %s34_s25, [#allocation6], %s715_s29, %s715_s29, %s716_s30  }
   0xf   :  { %s633_s10 = scalar_lea.vmem %s22_s27, 128  ;;  %p638_p6 = scmp.lt.s32.totalorder %s22_s27, %s22_s27 }
  0x10   :  { %p634_p5 = scmp.ne.s32.totalorder %s22_s27, %s633_s10  ;;  %p639_p7 = scmp.lt.s32.totalorder %s633_s10, %s633_s10 }
  0x12   :  { %p640_p8 = por %p639_p7, %p638_p6 }
  0x14   :  { %p641_p9 = pnand %p640_p8, %p634_p5 }
  0x16   :  { %644 = shalt.err (!%p641_p9)
}
  0x17   :  { %27 = dma.hbm_to_vmem [thread:$0]  %s830_s0, 128, %s22_s27, [#allocation3], %s715_s29, %s715_s29, %s716_s30  }
  0x18   :  { %s717_s13 = smov [#allocation7]   ;;  %s718_s15 = smov [#allocation8]  }
  0x19   :  { %s47_s14 = sshll.u32 %s717_s13, 4  ;;  %s61_s16 = sshll.u32 %s718_s15, 4  ;;  %s48_s14 = int_to_ptr.vmem [resolvable:$true] %s47_s14  ;;  %s62_s16 = int_to_ptr.vmem [resolvable:$true] %s61_s16 }
  0x1a   :  { %s653_s1 = scalar_lea.vmem %s48_s14, 1024  ;;  %p658_p11 = scmp.lt.s32.totalorder %s48_s14, %s48_s14 }
  0x1b   :  { %p654_p10 = scmp.ne.s32.totalorder %s48_s14, %s653_s1  ;;  %p659_p12 = scmp.lt.s32.totalorder %s653_s1, %s653_s1 }
  0x1d   :  { %p660_p13 = por %p659_p12, %p658_p11 }
  0x1f   :  { %p661_p0 = pnand %p660_p13, %p654_p10 }
  0x21   :  { %664 = shalt.err (!%p661_p0)
}
  0x22   :  { %53 = dma.hbm_to_vmem [thread:$0]  %s833_s3, 1024, %s48_s14, [#allocation6], %s715_s29, %s715_s29, %s716_s30  }
  0x23   :  { %s673_s0 = scalar_lea.vmem %s62_s16, 1024  ;;  %p678_p2 = scmp.lt.s32.totalorder %s62_s16, %s62_s16 }
  0x24   :  { %p674_p1 = scmp.ne.s32.totalorder %s62_s16, %s673_s0  ;;  %p679_p3 = scmp.lt.s32.totalorder %s673_s0, %s673_s0 }
  0x26   :  { %p680_p4 = por %p679_p3, %p678_p2 }
  0x28   :  { %p681_p5 = pnand %p680_p4, %p674_p1 }
  0x2a   :  { %684 = shalt.err (!%p681_p5)
}
  0x2b   :  { %67 = dma.hbm_to_vmem [thread:$0]  %s835_s5, 1024, %s62_s16, [#allocation9], %s715_s29, %s715_s29, %s716_s30  }
  0x2c   :  { %705 = dma.done.wait [#allocation3], 128  }
  0x2d   :  { %706 = vsyncadd [#allocation3], 4294967168 }
  0x2e   :  { %707 = dma.done.wait [#allocation6], 2048  }
  0x2f   :  { %708 = vsyncadd [#allocation6], 4294965248 }
  0x30   :  { %709 = dma.done.wait [#allocation9], 1024  }
  0x31   :  { %710 = vsyncadd [#allocation9], 4294966272  ;;  %v719_v0 = vmov 0.0   ;;  %vm720_vm0 = vmmov 0   ;;  %v580_v1 = vld [vmem:[#allocation5 + $0x38] sm:$0xff]   ;;  %v581_v2 = vld [vmem:[#allocation5 + $0x30] sm:$0xff]  }
  0x32   :  { %509 = vmatprep.subr.bf16.mxu0 %v719_v0  ;;  %525 = vmatprep.mubr.msk.bf16.mxu0 %vm720_vm0, %v719_v0  ;;  %v582_v3 = vld [vmem:[#allocation5 + $0x28] sm:$0xff]   ;;  %v589_v4 = vld [vmem:[#allocation7 + $0x38] sm:$0xff]   ;;  %v583_v5 = vld [vmem:[#allocation5 + $0x20] sm:$0xff]   ;;  %s721_s24 = smov [#allocation10]  }
  0x33   :  { %529 = vmatprep.subr.bf16.mxu1 %v719_v0  ;;  %545 = vmatprep.mubr.msk.bf16.mxu1 %vm720_vm0, %v719_v0  ;;  %v590_v6 = vld [vmem:[#allocation7 + $0x30] sm:$0xff]   ;;  %v584_v7 = vld [vmem:[#allocation5 + $0x18] sm:$0xff]   ;;  %v591_v8 = vld [vmem:[#allocation7 + $0x28] sm:$0xff]   ;;  %s440_s25 = sshll.u32 %s721_s24, 4  ;;  %s441_s25 = int_to_ptr.vmem [resolvable:$true] %s440_s25 }
  0x34   :  { %510 = vmatpush3.bf16.msra.mxu0 %v580_v1  ;;  %530 = vmatpush3.bf16.msra.mxu1 %v589_v4  ;;  %v585_v9 = vld [vmem:[#allocation5 + $0x10] sm:$0xff]   ;;  %v592_v10 = vld [vmem:[#allocation7 + $0x20] sm:$0xff]   ;;  %v586_v11 = vld [vmem:[#allocation5 + $0x8] sm:$0xff]   ;;  %p690_p7 = scmp.lt.s32.totalorder %s441_s25, %s441_s25 }
  0x35   :  { %511 = vmatprep.subr.bf16.mxu0 %v719_v0  ;;  %531 = vmatprep.subr.bf16.mxu1 %v719_v0  ;;  %v593_v12 = vld [vmem:[#allocation7 + $0x18] sm:$0xff]   ;;  %v587_v13 = vld [vmem:[#allocation5] sm:$0xff]   ;;  %v594_v15 = vld [vmem:[#allocation7 + $0x10] sm:$0xff]  }
  0x36   :  { %v588_v14 = vld [vmem:[#allocation2] sm:$0xff]   ;;  %v595_v16 = vld [vmem:[#allocation7 + $0x8] sm:$0xff]   ;;  %v596_v17 = vld [vmem:[#allocation7] sm:$0xff]  }
  0x37   :  { %v597_v18 = vld [vmem:[#allocation8 + $0x38] sm:$0xff]   ;;  %v598_v19 = vld [vmem:[#allocation8 + $0x30] sm:$0xff]   ;;  %v599_v20 = vld [vmem:[#allocation8 + $0x28] sm:$0xff]  }
  0x38   :  { %512 = vmatpush3.bf16.msra.mxu0 %v581_v2  ;;  %532 = vmatpush3.bf16.msra.mxu1 %v590_v6  ;;  %v600_v21 = vld [vmem:[#allocation8 + $0x20] sm:$0xff]   ;;  %v601_v22 = vld [vmem:[#allocation8 + $0x18] sm:$0xff]   ;;  %v602_v33 = vld [vmem:[#allocation8 + $0x10] sm:$0xff]  }
  0x39   :  { %513 = vmatprep.subr.bf16.mxu0 %v719_v0  ;;  %533 = vmatprep.subr.bf16.mxu1 %v719_v0  ;;  %v454_v23 = vld [vmem:[%s832_s2] ss:$0 sm:$0xff]  ;;  %v603_v34 = vld [vmem:[#allocation8 + $0x8] sm:$0xff]   ;;  %v604_v35 = vld [vmem:[#allocation8] sm:$0xff]  }
  0x3a   :  { %v464_v36 = vld [vmem:[%s834_s4] ss:$0 sm:$0xff]  ;;  %s685_s4 = scalar_lea.vmem %s441_s25, 256 }
  0x3b   :  { %v473_v46 = vld [vmem:[%s836_s6] ss:$0 sm:$0xff]  ;;  %p686_p6 = scmp.ne.s32.totalorder %s441_s25, %s685_s4  ;;  %p691_p8 = scmp.lt.s32.totalorder %s685_s4, %s685_s4 }
  0x3c   :  { %514 = vmatpush3.bf16.msra.mxu0 %v582_v3  ;;  %534 = vmatpush3.bf16.msra.mxu1 %v591_v8 }
  0x3d   :  { %515 = vmatprep.subr.bf16.mxu0 %v719_v0  ;;  %535 = vmatprep.subr.bf16.mxu1 %v719_v0  ;;  %p692_p9 = por %p691_p8, %p690_p7 }
  0x3f   :  { %p693_p10 = pnand %p692_p9, %p686_p6 }
  0x40   :  { %516 = vmatpush3.bf16.msra.mxu0 %v583_v5  ;;  %536 = vmatpush3.bf16.msra.mxu1 %v592_v10 }
  0x41   :  { %517 = vmatprep.subr.bf16.mxu0 %v719_v0  ;;  %537 = vmatprep.subr.bf16.mxu1 %v719_v0 }
  0x44   :  { %518 = vmatpush3.bf16.msra.mxu0 %v584_v7  ;;  %538 = vmatpush3.bf16.msra.mxu1 %v593_v12 }
  0x45   :  { %519 = vmatprep.subr.bf16.mxu0 %v719_v0  ;;  %539 = vmatprep.subr.bf16.mxu1 %v719_v0 }
  0x48   :  { %520 = vmatpush3.bf16.msra.mxu0 %v585_v9  ;;  %540 = vmatpush3.bf16.msra.mxu1 %v594_v15 }
  0x49   :  { %521 = vmatprep.subr.bf16.mxu0 %v719_v0  ;;  %541 = vmatprep.subr.bf16.mxu1 %v719_v0 }
  0x4c   :  { %522 = vmatpush3.bf16.msra.mxu0 %v586_v11  ;;  %542 = vmatpush3.bf16.msra.mxu1 %v595_v16 }
  0x4d   :  { %523 = vmatprep.subr.bf16.mxu0 %v719_v0  ;;  %543 = vmatprep.subr.bf16.mxu1 %v719_v0 }
  0x50   :  { %524 = vmatpush3.bf16.msra.mxu0 %v587_v13  ;;  %544 = vmatpush3.bf16.msra.mxu1 %v596_v17 }
  0x51   :  { %549 = vmatprep.subr.bf16.mxu0 %v719_v0 }
  0x53   :  { %526 = vmatmul.mubr.bf16.vlgmr.msra.gmra.mxu0 %v588_v14 }
  0x54   :  { %565 = vmatprep.mubr.msk.bf16.mxu0 %vm720_vm0, %v719_v0  ;;  %550 = vmatpush3.bf16.msra.mxu0 %v597_v18 }
  0x55   :  { %551 = vmatprep.subr.bf16.mxu0 %v719_v0 }
  0x58   :  { %552 = vmatpush3.bf16.msra.mxu0 %v598_v19 }
  0x59   :  { %553 = vmatprep.subr.bf16.mxu0 %v719_v0 }
  0x5c   :  { %554 = vmatpush3.bf16.msra.mxu0 %v599_v20 }
  0x5d   :  { %555 = vmatprep.subr.bf16.mxu0 %v719_v0 }
  0x60   :  { %556 = vmatpush3.bf16.msra.mxu0 %v600_v21 }
  0x61   :  { %557 = vmatprep.subr.bf16.mxu0 %v719_v0 }
  0x64   :  { %558 = vmatpush3.bf16.msra.mxu0 %v601_v22 }
  0x65   :  { %559 = vmatprep.subr.bf16.mxu0 %v719_v0 }
  0x68   :  { %560 = vmatpush3.bf16.msra.mxu0 %v602_v33 }
  0x69   :  { %561 = vmatprep.subr.bf16.mxu0 %v719_v0 }
  0x6c   :  { %562 = vmatpush3.bf16.msra.mxu0 %v603_v34 }
  0x6d   :  { %563 = vmatprep.subr.bf16.mxu0 %v719_v0 }
  0x70   :  { %564 = vmatpush3.bf16.msra.mxu0 %v604_v35 }
 0x113   :  { %v196_v24 = vpop.f32.mrf.mxu0 }
 0x114   :  { %v197_v26 = vadd.f32 %v454_v23, %v196_v24 }
 0x115   :  { %v527_v25 = vpop.f32.mrf.mxu0 }
 0x116   :  { %v203_v30 = vmax.f32 %v197_v26, 0.0 }
 0x117   :  { %v199_v27 = vpop.f32.mrf.mxu0 }
 0x118   :  { %v200_v28 = vadd.f32 %v454_v23, %v199_v27 }
 0x119   :  { %v528_v29 = vpop.f32.mrf.mxu0 }
 0x11a   :  { %v204_v31 = vmax.f32 %v200_v28, 0.0 }
 0x11c   :  { %v205_v32 = vpack.c.bf16 %v204_v31, %v203_v30 }
 0x11e   :  { %546 = vmatmul.mubr.bf16.vlgmr.msra.gmra.mxu1 %v205_v32 }
 0x1de   :  { %v311_v37 = vpop.f32.mrf.mxu1 }
 0x1df   :  { %v312_v39 = vadd.f32 %v464_v36, %v311_v37 }
 0x1e0   :  { %v547_v38 = vpop.f32.mrf.mxu1 }
 0x1e1   :  { %v318_v43 = vmax.f32 %v312_v39, 0.0 }
 0x1e2   :  { %v314_v40 = vpop.f32.mrf.mxu1 }
 0x1e3   :  { %v315_v41 = vadd.f32 %v464_v36, %v314_v40 }
 0x1e4   :  { %v548_v42 = vpop.f32.mrf.mxu1 }
 0x1e5   :  { %v319_v44 = vmax.f32 %v315_v41, 0.0 }
 0x1e7   :  { %v320_v45 = vpack.c.bf16 %v319_v44, %v318_v43 }
 0x1e9   :  { %566 = vmatmul.mubr.bf16.vlgmr.msra.gmra.mxu0 %v320_v45 }
 0x2a9   :  { %v426_v47 = vpop.f32.mrf.mxu0 }
 0x2aa   :  { %v427_v48 = vadd.f32 %v473_v46, %v426_v47 }
 0x2ab   :  { %v567_v49 = vpop.f32.mrf.mxu0 }
 0x2ac   :  { %433 = vst [vmem:[#allocation10] sm:$0xff] %v427_v48 }
 0x2ad   :  { %v429_v50 = vpop.f32.mrf.mxu0 }
 0x2ae   :  { %v430_v51 = vadd.f32 %v473_v46, %v429_v50 }
 0x2af   :  { %v568_v52 = vpop.f32.mrf.mxu0 }
 0x2b0   :  { %434 = vst [vmem:[#allocation10 + $0x8] sm:$0xff] %v430_v51 }
 0x2b1   :  { %696 = shalt.err (!%p693_p10)
}
 0x2b2   :  { %s722_s26 = smov 128   ;;  %s723_s6 = smov 8  }
 0x2b3   :  { %446 = dma.vmem_to_hbm [thread:$0]  %s441_s25, 256, %s837_s7, [#allocation4], %s722_s26, %s722_s26, %s723_s6  }
 0x2b4   :  { %711 = dma.done.wait [#allocation4], 256  }
 0x2b5   :  { %712 = vsyncadd [#allocation4], 4294967040 }
 0x2b6   :  { %450 = vsyncpa [#allocation3], 1 }
 0x2b7   :  { %451 = vsyncpa [#allocation6], 1 }
 0x2b8   :  { %452 = vsyncpa [#allocation9], 1 }
 0x2b9   :  { %453 = vsyncpa [#allocation4], 1 }

</bundles_post_ra>
